<compile_context>
chip_gen: v7x
topology: tpu7x:2x2x1
jax: 0.10.0
libtpu: 0.0.40
codegen_flags: <defaults>
</compile_context>

<pallas_src>
import functools
import math

import jax
import jax.numpy as jnp
from jax.experimental import pallas as pl
from jax.experimental.pallas import tpu as pltpu


# ----------------------------------------------------------------------------
# tiling helper
# ----------------------------------------------------------------------------
def _pick_tile(dim, pref, floor):
    """Largest tile <= pref that divides dim (>= floor so the (8,128) rule holds);
    falls back to the full dim (always legal)."""
    if dim <= pref:
        return dim
    t = pref
    while t >= floor:
        if dim % t == 0:
            return t
        t //= 2
    return dim


# ----------------------------------------------------------------------------
# Pallas kernels
# ----------------------------------------------------------------------------
def _matmul_kernel(*refs, activation, has_residual):
    # Tiled matmul with K-reduction grid axis and fused bias/ReLU/residual epilogue.
    if has_residual:
        x_ref, w_ref, b_ref, res_ref, o_ref, acc_ref = refs
    else:
        x_ref, w_ref, b_ref, o_ref, acc_ref = refs
        res_ref = None
    k = pl.program_id(2)

    @pl.when(k == 0)
    def _():
        acc_ref[...] = jnp.zeros_like(acc_ref)

    acc_ref[...] += jnp.dot(x_ref[...], w_ref[...],
                            preferred_element_type=jnp.float32)

    @pl.when(k == pl.num_programs(2) - 1)
    def _():
        y = acc_ref[...] + b_ref[...]
        if activation == "relu":
            y = jnp.maximum(y, 0.0)
        if res_ref is not None:
            y = y + res_ref[...]
        o_ref[...] = y.astype(o_ref.dtype)


def linear_pallas(x2d, w, b, activation=None, residual=None):
    """y = x @ w + b (+ optional ReLU) (+ optional fused residual add)."""
    M, K = x2d.shape
    Kw, N = w.shape
    assert K == Kw
    # Tile sizes: sized so (2 inputs x 2 bufs + out + f32 acc) stays well under
    # v7x's 64 MiB VMEM (also fine for v5e/v6e); lane dims stay multiples of 128.
    tm = _pick_tile(M, 256, 8)
    tn = _pick_tile(N, 512, 128)
    tk = _pick_tile(K, 512, 128)
    grid = (M // tm, N // tn, K // tk)

    x_bf = x2d.astype(jnp.bfloat16)
    w_bf = w.astype(jnp.bfloat16)
    b2 = b.reshape(1, N).astype(jnp.float32)

    in_specs = [
        pl.BlockSpec((tm, tk), lambda i, j, k: (i, k)),
        pl.BlockSpec((tk, tn), lambda i, j, k: (k, j)),
        pl.BlockSpec((1, tn), lambda i, j, k: (0, j)),
    ]
    args = [x_bf, w_bf, b2]
    if residual is not None:
        in_specs.append(pl.BlockSpec((tm, tn), lambda i, j, k: (i, j)))
        args.append(residual.astype(jnp.float32))

    kernel = functools.partial(_matmul_kernel, activation=activation,
                               has_residual=residual is not None)
    return pl.pallas_call(
        kernel,
        out_shape=jax.ShapeDtypeStruct((M, N), jnp.float32),
        grid=grid,
        in_specs=in_specs,
        out_specs=pl.BlockSpec((tm, tn), lambda i, j, k: (i, j)),
        scratch_shapes=[pltpu.VMEM((tm, tn), jnp.float32)],
        compiler_params=pltpu.CompilerParams(
            dimension_semantics=("parallel", "parallel", "arbitrary")),
    )(*args)


def _layernorm_kernel(x_ref, alpha_ref, bias_ref, o_ref, *, eps):
    # Matches: alpha * (x - mean) / (std + eps) + bias, with unbiased std.
    x = x_ref[...].astype(jnp.float32)                 # (tm, D)
    d = x.shape[-1]
    mean = jnp.mean(x, axis=-1, keepdims=True)
    var = jnp.sum((x - mean) ** 2, axis=-1, keepdims=True) / (d - 1)
    inv = pl.reciprocal(jnp.sqrt(var) + eps, approx=True)   # EUP, not a VALU divide
    o_ref[...] = (alpha_ref[...] * (x - mean) * inv + bias_ref[...]).astype(o_ref.dtype)


def layernorm_pallas(x, alpha, bias, eps=1e-6):
    shape = x.shape
    D = shape[-1]
    rows = x.size // D
    x2 = x.reshape(rows, D)
    tm = _pick_tile(rows, 256, 8)
    kernel = functools.partial(_layernorm_kernel, eps=eps)
    out = pl.pallas_call(
        kernel,
        out_shape=jax.ShapeDtypeStruct((rows, D), x.dtype),
        grid=(rows // tm,),
        in_specs=[
            pl.BlockSpec((tm, D), lambda i: (i, 0)),
            pl.BlockSpec((1, D), lambda i: (0, 0)),
            pl.BlockSpec((1, D), lambda i: (0, 0)),
        ],
        out_specs=pl.BlockSpec((tm, D), lambda i: (i, 0)),
        compiler_params=pltpu.CompilerParams(
            dimension_semantics=("parallel",)),
    )(x2, alpha.reshape(1, D), bias.reshape(1, D))
    return out.reshape(shape)


def _mha_kernel(q_ref, k_ref, v_ref, mask_ref, o_ref, *, heads, scale):
    # Lane-dense layout: q (tq, D), k/v (S, D), mask (1, S) additive, out (tq, D).
    q = q_ref[...] * scale                             # fold 1/sqrt(d_k) into q (bf16)
    k = k_ref[...]
    v = v_ref[...]
    m = mask_ref[...]                                  # (1, S) additive (0 / -1e9), f32
    d = q.shape[-1]
    dk = d // heads
    ctx = []
    for h in range(heads):                             # static unrolled head loop
        sl = slice(h * dk, (h + 1) * dk)
        s = jax.lax.dot_general(q[:, sl], k[:, sl],
                                (((1,), (1,)), ((), ())),
                                preferred_element_type=jnp.float32)   # (tq, S)
        p = jax.nn.softmax(s + m, axis=-1)             # f32 softmax
        ctx.append(jnp.dot(p.astype(v.dtype), v[:, sl],
                           preferred_element_type=jnp.float32))
    # single lane-dense (tq, D) store
    o_ref[...] = jnp.concatenate(ctx, axis=-1).astype(o_ref.dtype)


def attention_pallas(q, k, v, addmask, heads):
    # q, k, v: (B, S, D) bf16; addmask: (B, 1, S) additive f32.
    # TODO(synk): for long S convert to the flash pattern (kv grid axis + online
    #             softmax scratch) instead of full-S K/V blocks.
    B, S, D = q.shape
    dk = D // heads
    scale = 1.0 / math.sqrt(dk)
    tq = _pick_tile(S, 128, 8)
    kernel = functools.partial(_mha_kernel, heads=heads, scale=scale)
    return pl.pallas_call(
        kernel,
        out_shape=jax.ShapeDtypeStruct((B, S, D), jnp.float32),
        grid=(B, S // tq),
        in_specs=[
            pl.BlockSpec((None, tq, D), lambda b, qi: (b, qi, 0)),
            pl.BlockSpec((None, S, D), lambda b, qi: (b, 0, 0)),
            pl.BlockSpec((None, S, D), lambda b, qi: (b, 0, 0)),
            pl.BlockSpec((None, 1, S), lambda b, qi: (b, 0, 0)),
        ],
        out_specs=pl.BlockSpec((None, tq, D), lambda b, qi: (b, qi, 0)),
        compiler_params=pltpu.CompilerParams(
            dimension_semantics=("parallel", "parallel")),
    )(q, k, v, addmask)


def _posenc_kernel(x_ref, pe_ref, o_ref, *, scale):
    # out = x * sqrt(d_model) + pe   (dropout = identity)
    o_ref[...] = (x_ref[...].astype(jnp.float32) * scale + pe_ref[...]).astype(o_ref.dtype)


def posenc_pallas(x, pe, d_model):
    B, S, D = x.shape
    ts = _pick_tile(S, 256, 8)
    kernel = functools.partial(_posenc_kernel, scale=math.sqrt(d_model))
    return pl.pallas_call(
        kernel,
        out_shape=jax.ShapeDtypeStruct((B, S, D), x.dtype),
        grid=(B, S // ts),
        in_specs=[
            pl.BlockSpec((None, ts, D), lambda b, si: (b, si, 0)),
            pl.BlockSpec((ts, D), lambda b, si: (si, 0)),
        ],
        out_specs=pl.BlockSpec((None, ts, D), lambda b, si: (b, si, 0)),
        compiler_params=pltpu.CompilerParams(
            dimension_semantics=("parallel", "parallel")),
    )(x, pe)


# ----------------------------------------------------------------------------
# Model glue (plain JAX): parameter setup, reshapes
# ----------------------------------------------------------------------------
def sinusoidal_pe(max_len, d_model):
    pos = jnp.arange(max_len, dtype=jnp.float32)[:, None]
    i = jnp.arange(0, d_model, 2, dtype=jnp.float32)[None, :]
    angle = pos / jnp.power(10000.0, i / d_model)
    pe = jnp.zeros((max_len, d_model), jnp.float32)
    pe = pe.at[:, 0::2].set(jnp.sin(angle))
    pe = pe.at[:, 1::2].set(jnp.cos(angle))
    return pe


def init_linear(key, din, dout):
    kw, kb = jax.random.split(key)
    w = jax.random.normal(kw, (din, dout), jnp.float32) * 0.02
    b = jax.random.normal(kb, (dout,), jnp.float32) * 0.02
    return w, b


def init_encoder_params(key, vocab_size, dimension, N, heads, d_ff, max_len=200):
    keys = jax.random.split(key, 2 + N)
    embed = jax.random.normal(keys[0], (vocab_size, dimension), jnp.float32) * 0.02
    layers = []
    for li in range(N):
        lk = jax.random.split(keys[2 + li], 6)
        wq, bq = init_linear(lk[0], dimension, dimension)
        wk, bk = init_linear(lk[1], dimension, dimension)
        wv, bv = init_linear(lk[2], dimension, dimension)
        wo, bo = init_linear(lk[3], dimension, dimension)
        w1, b1 = init_linear(lk[4], dimension, d_ff)
        w2, b2 = init_linear(lk[5], d_ff, dimension)
        layers.append(dict(
            norm1_alpha=jnp.ones((dimension,), jnp.float32),
            norm1_bias=jnp.zeros((dimension,), jnp.float32),
            norm2_alpha=jnp.ones((dimension,), jnp.float32),
            norm2_bias=jnp.zeros((dimension,), jnp.float32),
            # fused Q|K|V projection, weights stored bf16 once (MXU-native input)
            wqkv=jnp.concatenate([wq, wk, wv], axis=1).astype(jnp.bfloat16),
            bqkv=jnp.concatenate([bq, bk, bv], axis=0),
            wo=wo.astype(jnp.bfloat16), bo=bo,
            w1=w1.astype(jnp.bfloat16), b1=b1,
            w2=w2.astype(jnp.bfloat16), b2=b2,
        ))
    return dict(
        embed=embed,
        pe=sinusoidal_pe(max_len, dimension),          # cached at init (like the PyTorch buffer)
        layers=layers,
        normf_alpha=jnp.ones((dimension,), jnp.float32),
        normf_bias=jnp.zeros((dimension,), jnp.float32),
        heads=heads,
        dimension=dimension,
    )


def multihead_attention(p, y, addmask, heads, residual):
    B, S, D = y.shape
    y2 = y.reshape(B * S, D)
    qkv = linear_pallas(y2, p["wqkv"], p["bqkv"]).reshape(B, S, 3 * D)   # one fused matmul
    q = qkv[..., :D].astype(jnp.bfloat16)
    k = qkv[..., D:2 * D].astype(jnp.bfloat16)
    v = qkv[..., 2 * D:].astype(jnp.bfloat16)
    ctx = attention_pallas(q, k, v, addmask, heads)                      # (B, S, D) f32
    out = linear_pallas(ctx.reshape(B * S, D), p["wo"], p["bo"],
                        residual=residual.reshape(B * S, D))             # residual fused
    return out.reshape(B, S, D)


def feedforward(p, y, residual):
    B, S, D = y.shape
    y2 = y.reshape(B * S, D)
    h = linear_pallas(y2, p["w1"], p["b1"], activation="relu")
    out = linear_pallas(h, p["w2"], p["b2"],
                        residual=residual.reshape(B * S, D))             # residual fused
    return out.reshape(B, S, D)


def encoder_layer(p, x, addmask, heads):
    # dropout_1 / dropout_2 are identity (inference mode)
    y = layernorm_pallas(x, p["norm1_alpha"], p["norm1_bias"])
    x = multihead_attention(p, y, addmask, heads, residual=x)
    y = layernorm_pallas(x, p["norm2_alpha"], p["norm2_bias"])
    x = feedforward(p, y, residual=x)
    return x


def encoder_forward(params, src, mask3):
    B, S = src.shape
    D = params["dimension"]
    # TODO(synk): embedding gather (nn.Embedding) kept in plain JAX (jnp.take);
    #             a data-dependent row gather has no clean BlockSpec expression.
    x = jnp.take(params["embed"], src, axis=0)                       # (B, S, D)
    x = posenc_pallas(x, params["pe"][:S], D)                        # x*sqrt(d) + pe
    # additive mask (0 / -1e9) built once; kernels just add it to the scores
    addmask = jnp.where(mask3 == 0, -1e9, 0.0).astype(jnp.float32)   # (B, 1, S)
    for lp in params["layers"]:
        x = encoder_layer(lp, x, addmask, params["heads"])
    return layernorm_pallas(x, params["normf_alpha"], params["normf_bias"])


# ----------------------------------------------------------------------------
if __name__ == "__main__":
    # Small shapes consistent with the module
    vocab_size = 50
    dimension = 32
    N = 2
    heads = 4
    d_ff = 64          # FeedForward hidden width (kept small; default in ref is 2048)
    B, S = 2, 8

    key = jax.random.PRNGKey(0)
    kp, ks = jax.random.split(key)
    params = init_encoder_params(kp, vocab_size, dimension, N, heads, d_ff)

    src = jax.random.randint(ks, (B, S), 0, vocab_size, dtype=jnp.int32)
    # padding mask (B, 1, S): 1 = attend, 0 = masked; mask out last 2 tokens of batch 1
    mask = jnp.ones((B, 1, S), jnp.float32)
    mask = mask.at[1, 0, S - 2:].set(0.0)

    out = encoder_forward(params, src, mask)
    out = jax.block_until_ready(out)

    assert out.shape == (B, S, dimension), out.shape
    assert bool(jnp.all(jnp.isfinite(out)))
    print("KERNEL_OK")
</pallas_src>

<mosaic_0001>
module attributes {stable_mosaic.version = 11 : i64} {
  func.func @_posenc_kernel(%arg0: i32, %arg1: i32, %arg2: memref<1x8x32xf32, #tpu.memory_space<vmem>>, %arg3: memref<8x32xf32, #tpu.memory_space<vmem>>, %arg4: memref<1x8x32xf32, #tpu.memory_space<vmem>>) attributes {dimension_semantics = [#tpu.dimension_semantics<parallel>, #tpu.dimension_semantics<parallel>], iteration_bounds = array<i64: 2, 1>, scalar_prefetch = 0 : i64, scratch_operands = 0 : i64, tpu.core_type = #tpu.core_type<tc>, window_params = [{transform_indices = @transform_0, window_bounds = array<i64: 1, 8, 32>}, {transform_indices = @transform_1, window_bounds = array<i64: 8, 32>}, {transform_indices = @transform_2, window_bounds = array<i64: 1, 8, 32>}]} {
    %c0 = arith.constant 0 : index
    %c0_0 = arith.constant 0 : index
    %c0_1 = arith.constant 0 : index
    %0 = vector.load %arg2[%c0, %c0_0, %c0_1] : memref<1x8x32xf32, #tpu.memory_space<vmem>>, vector<1x8x32xf32>
    %1 = vector.shape_cast %0 : vector<1x8x32xf32> to vector<8x32xf32>
    %cst = arith.constant 5.65685415 : f32
    %2 = vector.broadcast %cst : f32 to vector<8x32xf32>
    %3 = arith.mulf %1, %2 : vector<8x32xf32>
    %c0_2 = arith.constant 0 : index
    %c0_3 = arith.constant 0 : index
    %4 = vector.load %arg3[%c0_2, %c0_3] : memref<8x32xf32, #tpu.memory_space<vmem>>, vector<8x32xf32>
    %5 = arith.addf %3, %4 : vector<8x32xf32>
    %c0_4 = arith.constant 0 : index
    %c0_5 = arith.constant 0 : index
    %c0_6 = arith.constant 0 : index
    %6 = vector.load %arg4[%c0_4, %c0_5, %c0_6] : memref<1x8x32xf32, #tpu.memory_space<vmem>>, vector<1x8x32xf32>
    %7 = vector.shape_cast %6 : vector<1x8x32xf32> to vector<8x32xf32>
    %8 = vector.shape_cast %5 : vector<8x32xf32> to vector<1x8x32xf32>
    tpu.vector_store %arg4[%c0_4, %c0_5, %c0_6], %8 {strides = array<i32>} : memref<1x8x32xf32, #tpu.memory_space<vmem>>, vector<1x8x32xf32>,
    return
  }
  func.func @transform_0(%arg0: i32, %arg1: i32) -> (i32, i32, i32) {
    %c0_i32 = arith.constant 0 : i32
    %c0_i32_0 = arith.constant 0 : i32
    return %arg0, %arg1, %c0_i32 : i32, i32, i32
  }
  func.func @transform_1(%arg0: i32, %arg1: i32) -> (i32, i32) {
    %c0_i32 = arith.constant 0 : i32
    %c0_i32_0 = arith.constant 0 : i32
    return %arg1, %c0_i32 : i32, i32
  }
  func.func @transform_2(%arg0: i32, %arg1: i32) -> (i32, i32, i32) {
    %c0_i32 = arith.constant 0 : i32
    %c0_i32_0 = arith.constant 0 : i32
    return %arg0, %arg1, %c0_i32 : i32, i32, i32
  }
}

</mosaic_0001>

<bundles_post_ra>
// kernel: tpu_custom_call.1
= control target key start
LH: loop header
LB: loop body
LE: loop exit
PB: predicated region body
PF: predicated region fallthrough
CT: control target
= control target key end

     0   :  { %7 = vsyncpa [#allocation3], 0  ;;  %s777_s0 = inlined_call_operand.hbm [shape: f32[2,8,32], index: 0, kind: input, shape index: {}]   ;;  %s778_s1 = inlined_call_operand.hbm [shape: f32[8,32], index: 1, kind: input, shape index: {}]   ;;  %s779_s2 = inlined_call_operand.hbm [shape: f32[2,8,32], index: 2, kind: output, shape index: {}]  }
   0x1   :  { %9 = vsyncpa [#allocation3 + $0x1], 0 }
   0x2   :  { %10 = vsyncpa [#allocation6], 0 }
   0x3   :  { %11 = vsyncpa [#allocation4], 0 }
   0x4   :  { %13 = vsyncpa [#allocation4 + $0x1], 0  ;;  %s561_s9 = smov 0   ;;  %s563_s10 = smov 0  }
   0x5   :  { %s565_s11 = smov 0   ;;  %s567_s12 = smov 0  }
   0x6   :  { %s569_s13 = smov 0   ;;  %s571_s14 = smov 0  }
   0x7 LB: > { %s309_s15 = sadd.s32 4294967295, %s541_s14   ;;  %s310_s16 = sadd.s32 4294967294, %s541_s14   ;;  %s541_s14 = sphi %s571_s14, %s19_s14   ;;  %s537_s13 = sphi %s569_s13, %s804_s13   ;;  %s533_s12 = sphi %s567_s12, %s803_s12   ;;  %s529_s11 = sphi %s565_s11, %s802_s11   ;;  %s525_s10 = sphi %s563_s10, %s801_s10   ;;  %s521_s9 = sphi %s561_s9, %s800_s9  }
   0x8   : > { %p53_p0 = scmp.ne.s32.totalorder %s525_s10, %s521_s9  ;;  %p595_p1 = scmp.eq.s32.totalorder %s309_s15, 0 }
   0x9   : > { %p599_p2 = scmp.eq.s32.totalorder %s309_s15, 1  ;;  %p111_p3 = scmp.eq.s32.totalorder %s310_s16, 1 }
   0xa   : > { %s784_s17 = scalar_select %p595_p1, 1, 0 }
   0xb   : > { %s785_s18 = scalar_select %p599_p2, 1, 0 }
   0xc   : > { %p605_p4 = por %p595_p1, %p53_p0  ;;  %p311_p5 = scmp.ge.s32.totalorder %s541_s14, 1 }
   0xd   : > { %p610_p6 = por %p111_p3, %p53_p0  ;;  %p118_p7 = scmp.lt.s32.totalorder %s541_s14, 3 }
   0xe   : > { %s786_s19 = scalar_select %p605_p4, 1, 0 }
   0xf   : > { %s787_s20 = scalar_select %p610_p6, 1, 0 }
  0x10   : > { %p615_p8 = pnand %p311_p5, %p118_p7  ;;  %s543_s22 = smov [#allocation5]  }
  0x11   : > { %s133_s23 = sshll.u32 %s543_s22, 4  ;;  %s31_s25 = sadd.s32 1, %s537_s13  ;;  %s134_s23 = int_to_ptr.vmem [resolvable:$true] %s133_s23 }
  0x12   : > { %s788_s21 = scalar_select %p615_p8, 1, 0 }
  0x13   : > { %p332_p10 = pneg %p615_p8  ;;  %s40_s26 = sadd.s32 1, %s529_s11 }
  0x14   : > { %p630_p12 = scmp.ge.s32.totalorder %s31_s25, 2  ;;  %s397_s30 = scalar_lea.hbm %s778_s1, 128 }
  0x15   : > { %p624_p11 = pnand %p332_p10, %p595_p1  ;;  %p398_p13 = scmp.ne.s32.totalorder %s778_s1, %s397_s30 }
  0x16   : > { %s790_s27 = scalar_select %p630_p12, 1, 0 }
  0x17   : > { %p399_p0 = pneg %p624_p11  ;;  %p404_p7 = scmp.lt.u32.totalorder %s397_s30, %s778_s1 }
  0x19   : > { %p400_p3 = pnand %p399_p0, %p398_p13 }
  0x1b   : > { %p401_p5 = pneg %p400_p3 }
  0x1d   : > { %p406_p10 = pnand %p404_p7, %p401_p5 }
  0x1f   : > { %409 = shalt.err (!%p406_p10)
}
  0x20   : > { %s410_s7 = scalar_lea.vmem %s134_s23, 128  ;;  %p418_p4 = scmp.lt.s32.totalorder %s134_s23, %s134_s23 }
  0x21   : > { %p411_p9 = scmp.ne.s32.totalorder %s134_s23, %s410_s7  ;;  %p419_p8 = scmp.lt.s32.totalorder %s410_s7, %s410_s7 }
  0x23   : > { %p413_p6 = pnand %p411_p9, %p399_p0  ;;  %p420_p2 = por %p419_p8, %p418_p4 }
  0x25   : > { %p414_p1 = pneg %p413_p6 }
  0x27   : > { %p421_p12 = pnand %p420_p2, %p414_p1 }
  0x29   : > { %424 = shalt.err (!%p421_p12)
}
  0x2a   : > { %335 = dma.hbm_to_vmem [thread:$0]  (!%p624_p11), %s778_s1, 128, %s134_s23, [#allocation6]  }
  0x2b   : > { %p791_p4 = scmp.ne.s32.totalorder %s790_s27, 0  ;;  %p47_p1 = scmp.ne.s32.totalorder %s529_s11, %s525_s10 }
  0x2c   : > { %p48_p2 = scmp.eq.s32.totalorder %s541_s14, 0  ;;  %p345_p6 = scmp.lt.s32.totalorder %s541_s14, 2 }
  0x2d   : > { %s806_s25 = smov (%p791_p4, %s31_s25), 0  ;;  %p792_p12 = scmp.ne.s32.totalorder %s785_s18, 0 }
  0x2e   : > { %s35_s16 = ssub.s32 %s537_s13, %s806_s25  ;;  %p49_p9 = por %p48_p2, %p47_p1 }
  0x2f   : > { %p38_p8 = scmp.eq.s32.totalorder %s35_s16, 0  ;;  %p662_p13 = por %p792_p12, %p47_p1 }
  0x30   : > { %s144_s24 = sand.u32 1, %s529_s11   ;;  %s315_s27 = sshll.u32 %s537_s13, 7 }
  0x31   : > { %s670_s28 = scalar_select %p38_p8, %s529_s11, %s40_s26  }
  0x32   : > { %s314_s23 = sshll.u32 %s144_s24, 3  ;;  %s676_s3 = scalar_lea.hbm %s777_s0, %s315_s27 }
  0x33   : > { %s148_s18 = scalar_lea.vmem [#allocation2], %s314_s23  ;;  %p680_p11 = pnand %p345_p6, %p49_p9 }
  0x34   : > { %s156_s4 = sshll.u32 %s148_s18, 4  ;;  %s145_s26 = scalar_lea.sflag [#allocation3], %s144_s24  ;;  %s678_s4 = int_to_ptr.vmem [resolvable:$true] %s156_s4 }
  0x35   : > { %s425_s6 = scalar_lea.hbm %s676_s3, 128  ;;  %p427_p3 = pneg %p680_p11 }
  0x36   : > { %p426_p0 = scmp.ne.s32.totalorder %s676_s3, %s425_s6  ;;  %s430_s15 = scalar_lea.hbm %s777_s0, 256 }
  0x37   : > { %p431_p10 = scmp.lt.u32.totalorder %s676_s3, %s777_s0  ;;  %p432_p4 = scmp.lt.u32.totalorder %s430_s15, %s425_s6 }
  0x38   : > { %p428_p5 = pnand %p427_p3, %p426_p0  ;;  %p434_p2 = scmp.lt.u32.totalorder %s425_s6, %s676_s3 }
  0x39   : > { %p433_p1 = por %p432_p4, %p431_p10 }
  0x3a   : > { %p429_p7 = pneg %p428_p5 }
  0x3b   : > { %p435_p6 = por %p434_p2, %p433_p1 }
  0x3d   : > { %p436_p8 = pnand %p435_p6, %p429_p7 }
  0x3f   : > { %439 = shalt.err (!%p436_p8)
}
  0x40   : > { %s440_s24 = scalar_lea.vmem %s678_s4, 128  ;;  %s544_s27 = smov [#allocation2]  }
  0x41   : > { %p441_p9 = scmp.ne.s32.totalorder %s678_s4, %s440_s24  ;;  %s445_s29 = sshll.u32 %s544_s27, 4  ;;  %s446_s29 = int_to_ptr.vmem [resolvable:$false] %s445_s29 }
  0x42   : > { %s447_s30 = scalar_lea.vmem %s446_s29, 256  ;;  %p448_p5 = scmp.lt.s32.totalorder %s678_s4, %s446_s29 }
  0x43   : > { %p443_p12 = pnand %p441_p9, %p427_p3  ;;  %p449_p10 = scmp.lt.s32.totalorder %s447_s30, %s440_s24 }
  0x45   : > { %p444_p0 = pneg %p443_p12  ;;  %p450_p4 = por %p449_p10, %p448_p5 }
  0x47   : > { %p451_p1 = pnand %p450_p4, %p444_p0 }
  0x49   : > { %454 = shalt.err (!%p451_p1)
}
  0x4a   : > { %339 = dma.hbm_to_vmem [thread:$0]  (!%p680_p11), %s676_s3, 128, %s678_s4, %s145_s26  }
  0x4b   : > { %p795_p7 = scmp.ne.s32.totalorder %s788_s21, 0 }
  0x4c   : > { %s712_s18 = sand.u32 (!%p795_p7), 1, %s525_s10   ;;  %p796_p3 = scmp.ne.s32.totalorder (!%p795_p7), %s786_s19, 0 }
  0x4d   : > { %165 = sbr.rel (%p795_p7) target bundleno = 113 (0x71), region = 28  ;;  %s317_s6 = sshll.u32 (!%p795_p7), %s712_s18, 3 }
  0x4e   : > { %s168_s7 = scalar_lea.sflag (!%p795_p7), [#allocation3], %s712_s18  ;;  %s171_s8 = scalar_lea.vmem (!%p795_p7), [#allocation2], %s317_s6 }
  0x54   : > { %508 = dma.done.wait (%p796_p3), %s168_s7, 128  }
  0x55   : > { %510 = vsyncadd (%p796_p3), %s168_s7, 4294967168  ;;  %p797_p2 = scmp.ne.s32.totalorder %s784_s17, 0 }
  0x57   : > { %512 = dma.done.wait (%p797_p2), [#allocation6], 128  }
  0x58   : > { %514 = vsyncadd (%p797_p2), [#allocation6], 4294967168  ;;  %v196_v0 = vld [vmem:[%s171_s8] sm:$0xff]  ;;  %v198_v1 = vld [vmem:[#allocation5] sm:$0xff]  ;;  %s195_s21 = scalar_lea.vmem [#allocation7], %s317_s6  ;;  %s321_s4 = sshll.u32 %s533_s12, 7 }
  0x59   : > { %s217_s3 = sshll.u32 %s195_s21, 4  ;;  %v197_v2 = vmul.f32 5.656854, %v196_v0  ;;  %vm200_vm0 = vcmask 261120   ;;  %s730_s17 = scalar_lea.hbm %s779_s2, %s321_s4  ;;  %s725_s3 = int_to_ptr.vmem [resolvable:$true] %s217_s3 }
  0x5a   : > { %s203_s26 = scalar_lea.sflag [#allocation4], %s712_s18  ;;  %s455_s15 = scalar_lea.vmem %s725_s3, 128 }
  0x5b   : > { %v199_v3 = vadd.f32 %v198_v1, %v197_v2  ;;  %p456_p11 = scmp.ne.s32.totalorder %s725_s3, %s455_s15  ;;  %s545_s12 = smov [#allocation7]  }
  0x5c   : > { %s459_s16 = sshll.u32 %s545_s12, 4  ;;  %s460_s16 = int_to_ptr.vmem [resolvable:$false] %s459_s16 }
  0x5d   : > { %201 = vst.msk [vmem:[%s195_s21] sm:$0xff] %vm200_vm0, %v199_v3  ;;  %p457_p6 = pnand %p456_p11, %p662_p13  ;;  %s461_s23 = scalar_lea.vmem %s460_s16, 256 }
  0x5e   : > { %p462_p9 = scmp.lt.s32.totalorder %s725_s3, %s460_s16  ;;  %p463_p12 = scmp.lt.s32.totalorder %s461_s23, %s455_s15 }
  0x5f   : > { %p458_p8 = pneg %p457_p6 }
  0x60   : > { %p464_p0 = por %p463_p12, %p462_p9 }
  0x62   : > { %p465_p5 = pnand %p464_p0, %p458_p8 }
  0x64   : > { %468 = shalt.err (!%p465_p5)
}
  0x65   : > { %s469_s24 = scalar_lea.hbm %s730_s17, 128  ;;  %s473_s30 = scalar_lea.hbm %s779_s2, 256 }
  0x66   : > { %p470_p10 = scmp.ne.s32.totalorder %s730_s17, %s469_s24  ;;  %p474_p7 = scmp.lt.u32.totalorder %s730_s17, %s779_s2 }
  0x67   : > { %p475_p3 = scmp.lt.u32.totalorder %s473_s30, %s469_s24  ;;  %p477_p11 = scmp.lt.u32.totalorder %s469_s24, %s730_s17 }
  0x68   : > { %p471_p4 = pnand %p470_p10, %p662_p13 }
  0x69   : > { %p476_p2 = por %p475_p3, %p474_p7 }
  0x6a   : > { %p472_p1 = pneg %p471_p4 }
  0x6b   : > { %p478_p6 = por %p477_p11, %p476_p2 }
  0x6d   : > { %p479_p8 = pnand %p478_p6, %p472_p1 }
  0x6f   : > { %482 = shalt.err (!%p479_p8)
}
  0x70   : > { %330 = dma.vmem_to_hbm [thread:$0]  (%p662_p13), %s725_s3, 128, %s730_s17, %s203_s26  }
  0x71 PF: > { %s229_s7 = sand.u32 1, %s521_s9   ;;  %p798_p9 = scmp.ne.s32.totalorder %s787_s20, 0 }
  0x72   : > { %p799_p12 = scmp.ge.s32.totalorder %s541_s14, 2  ;;  %s230_s8 = scalar_lea.sflag [#allocation4], %s229_s7 }
  0x74   : > { %p341_p0 = pnand %p799_p12, %p798_p9 }
  0x76   : > { %516 = dma.done.wait (!%p341_p0), %s230_s8, 128  }
  0x77   : > { %518 = vsyncadd (!%p341_p0), %s230_s8, 4294967168  ;;  %s19_s14 = sadd.s32 1, %s541_s14   ;;  %s800_s9 = smov %s525_s10 }
  0x78   : > { %p16_p5 = scmp.ge.s32.totalorder %s19_s14, 4   ;;  %s801_s10 = smov %s529_s11 }
  0x79   : > { %s802_s11 = smov %s670_s28  ;;  %s803_s12 = smov %s537_s13 }
  0x7a   : > { %s804_s13 = smov %s806_s25  ;;  %18 = sbr.rel (!%p16_p5) target bundleno = 7 (0x7), region = 78 }
  0x81   :  { %235 = vsyncpa [#allocation3], 1 }
  0x82   :  { %237 = vsyncpa [#allocation3 + $0x1], 1 }
  0x83   :  { %238 = vsyncpa [#allocation6], 1 }
  0x84   :  { %239 = vsyncpa [#allocation4], 1 }
  0x85   :  { %241 = vsyncpa [#allocation4 + $0x1], 1 }

</bundles_post_ra>
